<compile_context>
chip_gen: v7x
topology: tpu7x:2x2x1
jax: 0.10.0
libtpu: 0.0.40
codegen_flags: <defaults>
</compile_context>

<pallas_src>
import functools

import jax
import jax.numpy as jnp
import numpy as np
from jax.experimental import pallas as pl
from jax.experimental.pallas import tpu as pltpu


def _round_up(x, m):
    return ((x + m - 1) // m) * m


# ---------------------------------------------------------------------------
# Kernels.  o[tb, to] = x^T[tb, tk] @ W[to, tk]^T  (+ bias row), accumulated
# directly into the resident f32 output tile across the K grid axis.
# ---------------------------------------------------------------------------

def _linear_bias_kernel(xT_ref, w_ref, b_ref, o_ref, *, compute_dtype):
    k = pl.program_id(2)

    @pl.when(k == 0)
    def _():
        # Bias applied exactly once per output tile; the (1, to) lane-dense
        # row broadcasts across the sublane (batch) axis.
        o_ref[...] = jnp.broadcast_to(b_ref[...], o_ref.shape).astype(o_ref.dtype)

    # W stays in its native (O, I) layout end-to-end: contraction on the rhs'
    # last (lane) dim is the standard "trans_b" MXU feed, so the transpose
    # happens in-VMEM, overlapped, instead of as an HBM round-trip.
    o_ref[...] += jax.lax.dot_general(
        xT_ref[...].astype(compute_dtype),
        w_ref[...].astype(compute_dtype),
        dimension_numbers=(((1,), (1,)), ((), ())),
        preferred_element_type=jnp.float32,
    )


def _linear_nobias_kernel(xT_ref, w_ref, o_ref, *, compute_dtype):
    k = pl.program_id(2)

    @pl.when(k == 0)
    def _():
        o_ref[...] = jnp.zeros_like(o_ref)

    o_ref[...] += jax.lax.dot_general(
        xT_ref[...].astype(compute_dtype),
        w_ref[...].astype(compute_dtype),
        dimension_numbers=(((1,), (1,)), ((), ())),
        preferred_element_type=jnp.float32,
    )


def _vmem_capacity_bytes():
    try:
        return int(pltpu.get_tpu_info().vmem_capacity_bytes)
    except Exception:
        return 64 << 20  # conservative (v7x-sized) fallback


def _choose_tiles(B, O, I, vmem_bytes):
    """Per-generation tile caps; full-extent (pad-free) blocks for small dims."""
    if vmem_bytes >= (100 << 20):          # 128 MiB parts: v5e / v6e
        tb_cap, to_cap, tk_cap = 512, 1024, 2048
    else:                                  # 64 MiB parts: v7x (or unknown)
        tb_cap, to_cap, tk_cap = 256, 1024, 1024

    tb = B if B <= tb_cap else tb_cap      # caps are multiples of 8 / 256
    to = O if O <= to_cap else to_cap
    tk = I if I <= tk_cap else tk_cap

    # v7x megacore: if the batch axis contributes a single block, give the O
    # ("parallel") axis >= 2 blocks so both TensorCores get work.  Only done
    # when it introduces no padding (O a multiple of 256).
    if tb == B and to == O and O >= 512 and O % 256 == 0:
        to = O // 2

    return tb, to, tk


def linear_forward(W, x, b=None, *, compute_dtype=jnp.float32,
                   return_transposed=False, tb=None, to=None, tk=None):
    """y = W @ x (+ b) as a tiled Pallas TPU kernel.

    W: (O, I), x: (I, B), b: (O, 1) or None.
    Returns (O, B) by default (module convention) or the lane-dense (B, O)
    transpose when return_transposed=True (saves one HBM round-trip).
    """
    O, I = W.shape
    I2, B = x.shape
    assert I == I2, "inner dims must match"

    vmem_bytes = _vmem_capacity_bytes()
    atb, ato, atk = _choose_tiles(B, O, I, vmem_bytes)
    tb = atb if tb is None else tb
    to = ato if to is None else to
    tk = atk if tk is None else tk

    B_pad = _round_up(B, tb)
    O_pad = _round_up(O, to)
    I_pad = _round_up(I, tk)

    # Lane-dense output y^T (B, O): the lhs is x^T.  This (I, B) -> (B, I)
    # transpose is the only wrapper-side layout op; it touches B*I bytes
    # (negligible next to streaming the O*I weight) and keeps the lhs
    # contraction on its last dim, the most robust MXU lowering path.
    xT = jnp.transpose(x)                      # (B, I)
    if (B_pad, I_pad) != (B, I):
        xT = jnp.pad(xT, ((0, B_pad - B), (0, I_pad - I)))

    W_in = W                                   # native (O, I); never transposed
    if (O_pad, I_pad) != (O, I):
        W_in = jnp.pad(W, ((0, O_pad - O), (0, I_pad - I)))

    grid = (B_pad // tb, O_pad // to, I_pad // tk)
    grid_i, grid_j, _ = grid

    in_specs = [
        pl.BlockSpec((tb, tk), lambda i, j, k: (i, k)),   # x^T tile
        pl.BlockSpec((to, tk), lambda i, j, k: (j, k)),   # W tile, native layout
    ]
    operands = [xT, W_in]

    if b is not None:
        bT = jnp.reshape(b, (1, O)).astype(jnp.float32)   # lane-dense bias row
        if O_pad != O:
            bT = jnp.pad(bT, ((0, 0), (0, O_pad - O)))
        in_specs.append(pl.BlockSpec((1, to), lambda i, j, k: (0, j)))
        operands.append(bT)
        kernel = functools.partial(_linear_bias_kernel, compute_dtype=compute_dtype)
    else:
        kernel = functools.partial(_linear_nobias_kernel, compute_dtype=compute_dtype)

    # Direct accumulation into the resident output tile requires f32 output.
    out_dtype = jnp.float32

    x_bytes = xT.dtype.itemsize
    w_bytes = W_in.dtype.itemsize
    cost = pl.CostEstimate(
        flops=2 * B_pad * O_pad * I_pad,
        transcendentals=0,
        # Count re-streaming: W is read once per batch block, x^T once per
        # output-column block.
        bytes_accessed=(B_pad * I_pad * x_bytes * grid_j
                        + O_pad * I_pad * w_bytes * grid_i
                        + B_pad * O_pad * 4
                        + (O_pad * 4 * grid_i if b is not None else 0)),
    )

    # VMEM: double-buffered x^T / W / bias tiles + double-buffered resident
    # f32 output tile, plus headroom; capped at ~75% of this generation's
    # physical VMEM (~96 MiB on v5e/v6e, ~48 MiB on v7x).
    blk_bytes = 2 * (tb * tk * x_bytes + to * tk * w_bytes + tb * to * 4 + to * 4)
    vmem_limit = int(min(int(vmem_bytes * 0.75),
                         max(32 << 20, blk_bytes + (16 << 20))))

    outT = pl.pallas_call(
        kernel,
        out_shape=jax.ShapeDtypeStruct((B_pad, O_pad), out_dtype),
        grid_spec=pltpu.PrefetchScalarGridSpec(
            num_scalar_prefetch=0,
            grid=grid,
            in_specs=in_specs,
            out_specs=pl.BlockSpec((tb, to), lambda i, j, k: (i, j)),
        ),
        compiler_params=pltpu.CompilerParams(
            dimension_semantics=("parallel", "parallel", "arbitrary"),
            vmem_limit_bytes=vmem_limit,
        ),
        cost_estimate=cost,
    )(*operands)

    outT = outT[:B, :O]
    if return_transposed:
        return outT                      # (B, O): lane-dense, no extra transpose
    return jnp.transpose(outT)           # module convention: (O, B)


class LinearPallas:
    """JAX/Pallas port of networks/Linear.py::Linear (forward, cbon=False path)."""

    def __init__(self, input_size, output_size, bias=False, key=None,
                 param_dtype=jnp.float32, compute_dtype=jnp.float32):
        if key is None:
            key = jax.random.PRNGKey(0)
        kw, kb = jax.random.split(key)
        # torch.rand -> uniform [0, 1).  param_dtype=bf16 halves weight
        # streaming bytes; compute_dtype=bf16 additionally uses the bf16-native
        # MXU on v6e/v7x.  Both default to f32 to match PyTorch numerics.
        self.W = jax.random.uniform(
            kw, (output_size, input_size), dtype=jnp.float32).astype(param_dtype)
        if bias:
            self.b = jax.random.uniform(
                kb, (output_size, 1), dtype=jnp.float32).astype(param_dtype)
        else:
            # bias=False: the torch module adds an all-zeros vector; skipping
            # the add is mathematically identical and avoids a useless DMA.
            self.b = None
        self.compute_dtype = compute_dtype
        # TODO(synk): the cb.register_linear / ticket.vmm analog-crossbar path
        # (cbon=True) and the custom autograd backward have no Pallas
        # equivalent; only the standard W.matmul(x) + b forward is implemented.

    def __call__(self, x, *, return_transposed=False):
        return linear_forward(self.W, x, self.b,
                              compute_dtype=self.compute_dtype,
                              return_transposed=return_transposed)


if __name__ == "__main__":
    key = jax.random.PRNGKey(0)
    k_w1, k_w2, k_x1, k_x2 = jax.random.split(key, 4)

    # Tolerances are loose enough to cover the MXU's f32-via-bf16-pass paths
    # while still catching real indexing/accumulation bugs.
    RTOL = ATOL = 1e-2

    # Case 1: bias=False (module default), single-block grid, full-extent tiles.
    I1, O1, B1 = 128, 128, 8
    mod = LinearPallas(I1, O1, bias=False, key=k_w1)
    x1 = jax.random.uniform(k_x1, (I1, B1), dtype=jnp.float32)
    y1 = jax.block_until_ready(mod(x1))
    y1_ref = np.asarray(mod.W, np.float32) @ np.asarray(x1, np.float32)
    assert y1.shape == (O1, B1)
    assert np.allclose(np.asarray(y1), y1_ref, rtol=RTOL, atol=ATOL), \
        float(np.max(np.abs(np.asarray(y1) - y1_ref)))

    # Case 2: bias=True, tile overrides force a real 3-D grid (2 output-column
    # blocks x 2 K reduction steps) to exercise the resident-output
    # accumulation and the pl.when(k==0) bias init.
    I2, O2, B2 = 256, 256, 16
    mod_b = LinearPallas(I2, O2, bias=True, key=k_w2)
    x2 = jax.random.uniform(k_x2, (I2, B2), dtype=jnp.float32)
    y2 = jax.block_until_ready(
        linear_forward(mod_b.W, x2, mod_b.b, to=128, tk=128))
    y2_ref = (np.asarray(mod_b.W, np.float32) @ np.asarray(x2, np.float32)
              + np.asarray(mod_b.b, np.float32))
    assert y2.shape == (O2, B2)
    assert np.allclose(np.asarray(y2), y2_ref, rtol=RTOL, atol=ATOL), \
        float(np.max(np.abs(np.asarray(y2) - y2_ref)))

    print("KERNEL_OK")
</pallas_src>

<mosaic_0001>
module attributes {stable_mosaic.version = 11 : i64} {
  func.func @_linear_nobias_kernel(%arg0: i32, %arg1: i32, %arg2: i32, %arg3: memref<8x128xf32, #tpu.memory_space<vmem>>, %arg4: memref<128x128xf32, #tpu.memory_space<vmem>>, %arg5: memref<8x128xf32, #tpu.memory_space<vmem>>) attributes {dimension_semantics = [#tpu.dimension_semantics<parallel>, #tpu.dimension_semantics<parallel>, #tpu.dimension_semantics<arbitrary>], iteration_bounds = array<i64: 1, 1, 1>, scalar_prefetch = 0 : i64, scratch_operands = 0 : i64, tpu.core_type = #tpu.core_type<tc>, window_params = [{transform_indices = @transform_0, window_bounds = array<i64: 8, 128>}, {transform_indices = @transform_1, window_bounds = array<i64: 128, 128>}, {transform_indices = @transform_2, window_bounds = array<i64: 8, 128>}]} {
    %c0_i32 = arith.constant 0 : i32
    %0 = arith.cmpi eq, %arg2, %c0_i32 : i32
    %1 = arith.extui %0 : i1 to i32
    %c0_i32_0 = arith.constant 0 : i32
    %2 = arith.cmpi ne, %1, %c0_i32_0 : i32
    scf.if %2 {
      %cst_8 = arith.constant 0.000000e+00 : f32
      %9 = vector.broadcast %cst_8 : f32 to vector<8x128xf32>
      %c0_9 = arith.constant 0 : index
      %c0_10 = arith.constant 0 : index
      %10 = vector.load %arg5[%c0_9, %c0_10] : memref<8x128xf32, #tpu.memory_space<vmem>>, vector<8x128xf32>
      tpu.vector_store %arg5[%c0_9, %c0_10], %9 {strides = array<i32>} : memref<8x128xf32, #tpu.memory_space<vmem>>, vector<8x128xf32>,
    } else {
    }
    %c0 = arith.constant 0 : index
    %c0_1 = arith.constant 0 : index
    %3 = vector.load %arg5[%c0, %c0_1] : memref<8x128xf32, #tpu.memory_space<vmem>>, vector<8x128xf32>
    %c0_2 = arith.constant 0 : index
    %c0_3 = arith.constant 0 : index
    %4 = vector.load %arg3[%c0_2, %c0_3] : memref<8x128xf32, #tpu.memory_space<vmem>>, vector<8x128xf32>
    %c0_4 = arith.constant 0 : index
    %c0_5 = arith.constant 0 : index
    %5 = vector.load %arg4[%c0_4, %c0_5] : memref<128x128xf32, #tpu.memory_space<vmem>>, vector<128x128xf32>
    %cst = arith.constant dense<0.000000e+00> : vector<8x128xf32>
    %6 = tpu.matmul %4, %5, %cst {dimension_numbers = #tpu.dot_dimension_numbers<[1], [1], [0], [0], [0, 0, 1, 0], [], []>} : vector<8x128xf32>, vector<128x128xf32>, vector<8x128xf32> -> vector<8x128xf32>
    %7 = arith.addf %3, %6 : vector<8x128xf32>
    %c0_6 = arith.constant 0 : index
    %c0_7 = arith.constant 0 : index
    %8 = vector.load %arg5[%c0_6, %c0_7] : memref<8x128xf32, #tpu.memory_space<vmem>>, vector<8x128xf32>
    tpu.vector_store %arg5[%c0_6, %c0_7], %7 {strides = array<i32>} : memref<8x128xf32, #tpu.memory_space<vmem>>, vector<8x128xf32>,
    return
  }
  func.func @transform_0(%arg0: i32, %arg1: i32, %arg2: i32) -> (i32, i32) {
    %c0_i32 = arith.constant 0 : i32
    return %arg0, %arg2 : i32, i32
  }
  func.func @transform_1(%arg0: i32, %arg1: i32, %arg2: i32) -> (i32, i32) {
    %c0_i32 = arith.constant 0 : i32
    return %arg1, %arg2 : i32, i32
  }
  func.func @transform_2(%arg0: i32, %arg1: i32, %arg2: i32) -> (i32, i32) {
    %c0_i32 = arith.constant 0 : i32
    return %arg0, %arg1 : i32, i32
  }
}

</mosaic_0001>

<bundles_post_ra>
// kernel: tpu_custom_call.1
= control target key start
LH: loop header
LB: loop body
LE: loop exit
PB: predicated region body
PF: predicated region fallthrough
CT: control target
= control target key end

     0   :  { %7 = vsyncpa [#allocation3], 0  ;;  %s371_s0 = inlined_call_operand.hbm [shape: f32[8,128], index: 0, kind: input, shape index: {}]   ;;  %s372_s1 = inlined_call_operand.hbm [shape: f32[128,128], index: 1, kind: input, shape index: {}]   ;;  %s373_s2 = inlined_call_operand.hbm [shape: f32[8,128], index: 2, kind: output, shape index: {}]  }
   0x1   :  { %8 = vsyncpa [#allocation6], 0 }
   0x2   :  { %9 = vsyncpa [#allocation4], 0  ;;  %s305_s9 = smov [#allocation2]   ;;  %s306_s11 = smov [#allocation5]  }
   0x3   :  { %s16_s10 = sshll.u32 %s305_s9, 4  ;;  %s25_s12 = sshll.u32 %s306_s11, 4  ;;  %s17_s10 = int_to_ptr.vmem [resolvable:$true] %s16_s10  ;;  %s328_s12 = int_to_ptr.vmem [resolvable:$true] %s25_s12 }
   0x4   :  { %s233_s15 = scalar_lea.hbm %s371_s0, 128 }
   0x5   :  { %p234_p0 = scmp.ne.s32.totalorder %s371_s0, %s233_s15  ;;  %p237_p1 = scmp.lt.u32.totalorder %s233_s15, %s371_s0 }
   0x7   :  { %p239_p2 = pnand %p237_p1, %p234_p0 }
   0x9   :  { %242 = shalt.err (!%p239_p2)
}
   0xa   :  { %s243_s20 = scalar_lea.vmem %s17_s10, 128  ;;  %p248_p4 = scmp.lt.s32.totalorder %s17_s10, %s17_s10 }
   0xb   :  { %p244_p3 = scmp.ne.s32.totalorder %s17_s10, %s243_s20  ;;  %p249_p5 = scmp.lt.s32.totalorder %s243_s20, %s243_s20 }
   0xd   :  { %p250_p6 = por %p249_p5, %p248_p4 }
   0xf   :  { %p251_p7 = pnand %p250_p6, %p244_p3 }
  0x11   :  { %254 = shalt.err (!%p251_p7)
}
  0x12   :  { %19 = dma.hbm_to_vmem [thread:$0]  %s371_s0, 128, %s17_s10, [#allocation3]  }
  0x13   :  { %s255_s25 = scalar_lea.hbm %s372_s1, 2048 }
  0x14   :  { %p256_p8 = scmp.ne.s32.totalorder %s372_s1, %s255_s25  ;;  %p259_p9 = scmp.lt.u32.totalorder %s255_s25, %s372_s1 }
  0x16   :  { %p261_p10 = pnand %p259_p9, %p256_p8 }
  0x18   :  { %264 = shalt.err (!%p261_p10)
}
  0x19   :  { %s265_s30 = scalar_lea.vmem %s328_s12, 2048  ;;  %p270_p12 = scmp.lt.s32.totalorder %s328_s12, %s328_s12 }
  0x1a   :  { %p266_p11 = scmp.ne.s32.totalorder %s328_s12, %s265_s30  ;;  %p271_p13 = scmp.lt.s32.totalorder %s265_s30, %s265_s30 }
  0x1c   :  { %p272_p0 = por %p271_p13, %p270_p12 }
  0x1e   :  { %p273_p1 = pnand %p272_p0, %p266_p11 }
  0x20   :  { %276 = shalt.err (!%p273_p1)
}
  0x21   :  { %s307_s0 = smov 128   ;;  %s308_s3 = smov 8  }
  0x22   :  { %31 = dma.hbm_to_vmem [thread:$0]  %s372_s1, 2048, %s328_s12, [#allocation6], %s307_s0, %s307_s0, %s308_s3  }
  0x23   :  { %299 = dma.done.wait [#allocation3], 128  }
  0x24   :  { %300 = vsyncadd [#allocation3], 4294967168 }
  0x25   :  { %301 = dma.done.wait [#allocation6], 2048  }
  0x26   :  { %302 = vsyncadd [#allocation6], 4294965248  ;;  %v309_v0 = vmov 0.0|0.0   ;;  %vm310_vm0 = vmmov 0   ;;  %v311_v1 = vmov 0.0   ;;  %v45_v2 = vld [vmem:[#allocation5] sm:$0xff] }
  0x27   :  { %201 = vmatprep.subr.bf16.mxu0 %v309_v0  ;;  %198 = vmatprep.mubr.msk.f32.mxu0 %vm310_vm0, %v311_v1  ;;  %v46_v3 = vld [vmem:[#allocation5 + $0x8] sm:$0xff]  ;;  %v47_v5 = vld [vmem:[#allocation5 + $0x10] sm:$0xff]  ;;  %v48_v6 = vld [vmem:[#allocation5 + $0x18] sm:$0xff]  ;;  %s312_s1 = smov [#allocation7]  }
  0x28   :  { %v202_v4 = vpack.c.bf16 %v46_v3, %v45_v2  ;;  %v205_v7 = vpack.c.bf16 %v48_v6, %v47_v5  ;;  %v49_v8 = vld [vmem:[#allocation5 + $0x20] sm:$0xff]  ;;  %v50_v9 = vld [vmem:[#allocation5 + $0x28] sm:$0xff]  ;;  %v51_v11 = vld [vmem:[#allocation5 + $0x30] sm:$0xff]  ;;  %s139_s6 = sshll.u32 %s312_s1, 4  ;;  %s140_s6 = int_to_ptr.vmem [resolvable:$true] %s139_s6 }
  0x29   :  { %v208_v10 = vpack.c.bf16 %v50_v9, %v49_v8  ;;  %v52_v12 = vld [vmem:[#allocation5 + $0x38] sm:$0xff]  ;;  %v53_v14 = vld [vmem:[#allocation5 + $0x40] sm:$0xff]  ;;  %v54_v15 = vld [vmem:[#allocation5 + $0x48] sm:$0xff]  ;;  %s277_s7 = scalar_lea.vmem %s140_s6, 128  ;;  %p282_p3 = scmp.lt.s32.totalorder %s140_s6, %s140_s6 }
  0x2a   :  { %203 = vmatpush3.bf16.xpose.msra.mxu0 %v202_v4  ;;  %v211_v13 = vpack.c.bf16 %v52_v12, %v51_v11  ;;  %v214_v16 = vpack.c.bf16 %v54_v15, %v53_v14  ;;  %v55_v17 = vld [vmem:[#allocation5 + $0x50] sm:$0xff]  ;;  %v56_v18 = vld [vmem:[#allocation5 + $0x58] sm:$0xff]  ;;  %v57_v20 = vld [vmem:[#allocation5 + $0x60] sm:$0xff]  ;;  %p278_p2 = scmp.ne.s32.totalorder %s140_s6, %s277_s7  ;;  %p283_p4 = scmp.lt.s32.totalorder %s277_s7, %s277_s7 }
  0x2b   :  { %204 = vmatprep.subr.bf16.mxu0 %v309_v0  ;;  %v217_v19 = vpack.c.bf16 %v56_v18, %v55_v17  ;;  %v58_v21 = vld [vmem:[#allocation5 + $0x68] sm:$0xff]  ;;  %v59_v23 = vld [vmem:[#allocation5 + $0x70] sm:$0xff]  ;;  %v60_v24 = vld [vmem:[#allocation5 + $0x78] sm:$0xff] }
  0x2c   :  { %v220_v22 = vpack.c.bf16 %v58_v21, %v57_v20  ;;  %v223_v25 = vpack.c.bf16 %v60_v24, %v59_v23  ;;  %v44_v26 = vld [vmem:[#allocation2] sm:$0xff]  ;;  %p284_p5 = por %p283_p4, %p282_p3 }
  0x2e   :  { %p285_p6 = pnand %p284_p5, %p278_p2 }
  0x32   :  { %206 = vmatpush3.bf16.xpose.msra.mxu0 %v205_v7 }
  0x33   :  { %207 = vmatprep.subr.bf16.mxu0 %v309_v0 }
  0x3a   :  { %209 = vmatpush3.bf16.xpose.msra.mxu0 %v208_v10 }
  0x3b   :  { %210 = vmatprep.subr.bf16.mxu0 %v309_v0 }
  0x42   :  { %212 = vmatpush3.bf16.xpose.msra.mxu0 %v211_v13 }
  0x43   :  { %213 = vmatprep.subr.bf16.mxu0 %v309_v0 }
  0x4a   :  { %215 = vmatpush3.bf16.xpose.msra.mxu0 %v214_v16 }
  0x4b   :  { %216 = vmatprep.subr.bf16.mxu0 %v309_v0 }
  0x52   :  { %218 = vmatpush3.bf16.xpose.msra.mxu0 %v217_v19 }
  0x53   :  { %219 = vmatprep.subr.bf16.mxu0 %v309_v0 }
  0x5a   :  { %221 = vmatpush3.bf16.xpose.msra.mxu0 %v220_v22 }
  0x5b   :  { %222 = vmatprep.subr.bf16.mxu0 %v309_v0 }
  0x62   :  { %224 = vmatpush3.bf16.xpose.msra.mxu0 %v223_v25 }
  0x69   :  { %199 = vmatmul.mubr.f32.vlgmr.msra.gmra.mrb[0].mxu0 %v44_v26 }
 0x13c   :  { %v127_v27 = vpop.f32.mrb[0].mxu0 }
 0x13d   :  { %v200_v28 = vpop.f32.mrb[1].mxu0  ;;  %132 = vst [vmem:[#allocation7] sm:$0xff] %v127_v27 }
 0x13e   :  { %288 = shalt.err (!%p285_p6)
}
 0x13f   :  { %s289_s10 = scalar_lea.hbm %s373_s2, 128 }
 0x140   :  { %p290_p7 = scmp.ne.s32.totalorder %s373_s2, %s289_s10  ;;  %p293_p8 = scmp.lt.u32.totalorder %s289_s10, %s373_s2 }
 0x142   :  { %p295_p9 = pnand %p293_p8, %p290_p7 }
 0x144   :  { %298 = shalt.err (!%p295_p9)
}
 0x145   :  { %142 = dma.vmem_to_hbm [thread:$0]  %s140_s6, 128, %s373_s2, [#allocation4]  }
 0x146   :  { %303 = dma.done.wait [#allocation4], 128  }
 0x147   :  { %304 = vsyncadd [#allocation4], 4294967168 }
 0x148   :  { %146 = vsyncpa [#allocation3], 1 }
 0x149   :  { %147 = vsyncpa [#allocation6], 1 }
 0x14a   :  { %148 = vsyncpa [#allocation4], 1 }

</bundles_post_ra>
